<compile_context>
chip_gen: v7x
topology: tpu7x:2x2x1
jax: 0.10.0
libtpu: 0.0.40
codegen_flags: <defaults>
</compile_context>

<pallas_src>
import jax
import jax.numpy as jnp
from jax.experimental import pallas as pl
from jax.experimental.pallas import tpu as pltpu

HIDDEN_UNITS = 82      # from the module
NUM_CLASSES = 4        # output_shape = len(train_data.classes); small synthetic value

LANE = 128             # TPU lane width
SUBLANE = 8            # TPU sublane count
TM_MAX = 1024          # batch tile rows: f32 x tile 12 MiB, 2x buffered = 24 MiB


def _round_up(x, m):
    return ((x + m - 1) // m) * m


def mlp_kernel(x_ref, w1_ref, b1_ref, w2_ref, b2_ref, o_ref):
    # x: (TM, D) f32  -> cast to bf16 on the VPU (hidden under the x DMA)
    # w1: (D, Hp) bf16, b1: (1, Hp) f32, w2: (Hp, Op) bf16, b2: (1, Op) f32
    # o: (TM, Op) bf16
    x = x_ref[...].astype(jnp.bfloat16)
    h = jnp.dot(x, w1_ref[...], preferred_element_type=jnp.float32)
    h = jnp.maximum(h + b1_ref[...], 0.0)                       # ReLU 1 (f32)
    y = jnp.dot(h.astype(jnp.bfloat16), w2_ref[...],
                preferred_element_type=jnp.float32)
    o_ref[...] = jnp.maximum(y + b2_ref[...], 0.0).astype(o_ref.dtype)  # ReLU 2


def rucham_psa_forward(x_nchw, w1, b1, w2, b2):
    """Forward pass. x_nchw: (N, C, H, W) f32; w1: (D, 82); b1: (1, 82);
    w2: (82, O); b2: (1, O). Returns (N, O) bf16."""
    n = x_nchw.shape[0]
    x2d = x_nchw.reshape(n, -1)            # torch.nn.Flatten row order; fed as f32
    d = x2d.shape[1]
    h = w1.shape[1]
    o = w2.shape[1]

    # --- lane padding for weights (tiny, fetched once) ---------------------------
    hp = _round_up(h, LANE)                # 82 -> 128
    op = _round_up(o, LANE)                # 4  -> 128

    # Batch tile: multiple of 8 rows (or the whole batch if it is tiny); aim for
    # >=2 grid steps so "parallel" can split work across v7x's two TensorCores.
    if n <= SUBLANE:
        tm = n
    else:
        tm = min(TM_MAX, _round_up(pl.cdiv(n, 2), SUBLANE))
    grid = (pl.cdiv(n, tm),)               # partial last tile handled by Pallas;
                                           # rows are independent, OOB writes dropped

    w1_p = jnp.zeros((d, hp), jnp.bfloat16).at[:, :h].set(w1.astype(jnp.bfloat16))
    b1_p = jnp.zeros((1, hp), jnp.float32).at[:, :h].set(b1.astype(jnp.float32))
    w2_p = jnp.zeros((hp, op), jnp.bfloat16).at[:h, :o].set(w2.astype(jnp.bfloat16))
    b2_p = jnp.zeros((1, op), jnp.float32).at[:, :o].set(b2.astype(jnp.float32))

    cost = pl.CostEstimate(
        flops=2 * n * d * hp + 2 * n * hp * op,
        transcendentals=0,
        bytes_accessed=(x2d.size * 4                       # x streamed as f32
                        + w1_p.size * 2 + w2_p.size * 2    # bf16 weights
                        + b1_p.size * 4 + b2_p.size * 4    # f32 biases
                        + n * op * 2),                     # bf16 output
    )

    def resident(shape):
        # Constant block index: fetched once, kept VMEM-resident, single-buffered.
        return pl.BlockSpec(shape, lambda i: (0, 0), pipeline_mode=pl.Buffered(1))

    out_p = pl.pallas_call(
        mlp_kernel,
        out_shape=jax.ShapeDtypeStruct((n, op), jnp.bfloat16),
        grid=grid,
        in_specs=[
            pl.BlockSpec((tm, d), lambda i: (i, 0)),   # x: batch-tiled, double-buffered
            resident((d, hp)),                         # w1
            resident((1, hp)),                         # b1
            resident((hp, op)),                        # w2
            resident((1, op)),                         # b2
        ],
        out_specs=pl.BlockSpec((tm, op), lambda i: (i, 0)),
        compiler_params=pltpu.CompilerParams(
            dimension_semantics=("parallel",),         # megacore-shardable on v7x
            vmem_limit_bytes=32 << 20),                # safe on v5e/v6e/v7x
        cost_estimate=cost,
    )(x2d, w1_p, b1_p, w2_p, b2_p)

    # Only lane padding remains (rows are exact).  Downstream consumers that can
    # take the 128-wide padded layout may skip this slice entirely.
    return out_p[:, :o]


def init_params(key, in_features, hidden, out_features):
    # Deterministic init mimicking nn.Linear default: U(-1/sqrt(fan_in), 1/sqrt(fan_in))
    k1, k2, k3, k4 = jax.random.split(key, 4)
    bound1 = 1.0 / jnp.sqrt(in_features)
    bound2 = 1.0 / jnp.sqrt(hidden)
    w1 = jax.random.uniform(k1, (in_features, hidden), jnp.float32, -bound1, bound1)
    b1 = jax.random.uniform(k2, (1, hidden), jnp.float32, -bound1, bound1)
    w2 = jax.random.uniform(k3, (hidden, out_features), jnp.float32, -bound2, bound2)
    b2 = jax.random.uniform(k4, (1, out_features), jnp.float32, -bound2, bound2)
    return w1, b1, w2, b2


if __name__ == "__main__":
    key = jax.random.PRNGKey(0)
    kx, kp = jax.random.split(key)

    # Images: Resize(32) + ToTensor() -> (N, 3, 32, 32) in [0, 1]
    batch, channels, spatial = 2, 3, 32
    x = jax.random.uniform(kx, (batch, channels, spatial, spatial), jnp.float32)

    in_features = channels * spatial * spatial  # 3072
    w1, b1, w2, b2 = init_params(kp, in_features, HIDDEN_UNITS, NUM_CLASSES)

    out = rucham_psa_forward(x, w1, b1, w2, b2)
    out = jax.block_until_ready(out)

    # Reference check in plain JAX (f32). Kernel feeds the MXU in bf16 with f32
    # accumulation and stores bf16, so use a tolerance consistent with that.
    x2d = x.reshape(batch, -1)
    ref = jnp.maximum(jnp.maximum(x2d @ w1 + b1, 0.0) @ w2 + b2, 0.0)
    assert out.shape == (batch, NUM_CLASSES)
    assert jnp.allclose(out.astype(jnp.float32), ref, atol=3e-2, rtol=3e-2), (out, ref)

    print("KERNEL_OK")
</pallas_src>

<mosaic_0001>
module attributes {stable_mosaic.version = 11 : i64} {
  func.func @mlp_kernel(%arg0: i32, %arg1: memref<2x3072xf32, #tpu.memory_space<vmem>>, %arg2: memref<3072x128xbf16, #tpu.memory_space<vmem>>, %arg3: memref<1x128xf32, #tpu.memory_space<vmem>>, %arg4: memref<128x128xbf16, #tpu.memory_space<vmem>>, %arg5: memref<1x128xf32, #tpu.memory_space<vmem>>, %arg6: memref<2x128xbf16, #tpu.memory_space<vmem>>) attributes {dimension_semantics = [#tpu.dimension_semantics<parallel>], iteration_bounds = array<i64: 1>, scalar_prefetch = 0 : i64, scratch_operands = 0 : i64, tpu.core_type = #tpu.core_type<tc>, window_params = [{transform_indices = @transform_0, window_bounds = array<i64: 2, 3072>}, {pipeline_mode = #tpu.pipeline_mode<synchronous>, transform_indices = @transform_1, window_bounds = array<i64: 3072, 128>}, {pipeline_mode = #tpu.pipeline_mode<synchronous>, transform_indices = @transform_2, window_bounds = array<i64: 1, 128>}, {pipeline_mode = #tpu.pipeline_mode<synchronous>, transform_indices = @transform_3, window_bounds = array<i64: 128, 128>}, {pipeline_mode = #tpu.pipeline_mode<synchronous>, transform_indices = @transform_4, window_bounds = array<i64: 1, 128>}, {transform_indices = @transform_5, window_bounds = array<i64: 2, 128>}]} {
    %c0 = arith.constant 0 : index
    %c0_0 = arith.constant 0 : index
    %0 = vector.load %arg1[%c0, %c0_0] : memref<2x3072xf32, #tpu.memory_space<vmem>>, vector<2x3072xf32>
    %1 = arith.truncf %0 : vector<2x3072xf32> to vector<2x3072xbf16>
    %c0_1 = arith.constant 0 : index
    %c0_2 = arith.constant 0 : index
    %2 = vector.load %arg2[%c0_1, %c0_2] : memref<3072x128xbf16, #tpu.memory_space<vmem>>, vector<3072x128xbf16>
    %cst = arith.constant dense<0.000000e+00> : vector<2x128xf32>
    %3 = tpu.matmul %1, %2, %cst {dimension_numbers = #tpu.dot_dimension_numbers<[1], [0], [0], [1], [0, 0, 1, 1], [], []>} : vector<2x3072xbf16>, vector<3072x128xbf16>, vector<2x128xf32> -> vector<2x128xf32>
    %c0_3 = arith.constant 0 : index
    %c0_4 = arith.constant 0 : index
    %4 = vector.load %arg3[%c0_3, %c0_4] : memref<1x128xf32, #tpu.memory_space<vmem>>, vector<1x128xf32>
    %5 = vector.broadcast %4 : vector<1x128xf32> to vector<2x128xf32>
    %6 = arith.addf %3, %5 : vector<2x128xf32>
    %cst_5 = arith.constant 0.000000e+00 : f32
    %7 = vector.broadcast %cst_5 : f32 to vector<2x128xf32>
    %8 = arith.maximumf %6, %7 : vector<2x128xf32>
    %9 = arith.truncf %8 : vector<2x128xf32> to vector<2x128xbf16>
    %c0_6 = arith.constant 0 : index
    %c0_7 = arith.constant 0 : index
    %10 = vector.load %arg4[%c0_6, %c0_7] : memref<128x128xbf16, #tpu.memory_space<vmem>>, vector<128x128xbf16>
    %cst_8 = arith.constant dense<0.000000e+00> : vector<2x128xf32>
    %11 = tpu.matmul %9, %10, %cst_8 {dimension_numbers = #tpu.dot_dimension_numbers<[1], [0], [0], [1], [0, 0, 1, 1], [], []>} : vector<2x128xbf16>, vector<128x128xbf16>, vector<2x128xf32> -> vector<2x128xf32>
    %c0_9 = arith.constant 0 : index
    %c0_10 = arith.constant 0 : index
    %12 = vector.load %arg5[%c0_9, %c0_10] : memref<1x128xf32, #tpu.memory_space<vmem>>, vector<1x128xf32>
    %13 = vector.broadcast %12 : vector<1x128xf32> to vector<2x128xf32>
    %14 = arith.addf %11, %13 : vector<2x128xf32>
    %cst_11 = arith.constant 0.000000e+00 : f32
    %15 = vector.broadcast %cst_11 : f32 to vector<2x128xf32>
    %16 = arith.maximumf %14, %15 : vector<2x128xf32>
    %17 = arith.truncf %16 : vector<2x128xf32> to vector<2x128xbf16>
    %c0_12 = arith.constant 0 : index
    %c0_13 = arith.constant 0 : index
    %18 = vector.load %arg6[%c0_12, %c0_13] : memref<2x128xbf16, #tpu.memory_space<vmem>>, vector<2x128xbf16>
    tpu.vector_store %arg6[%c0_12, %c0_13], %17 {strides = array<i32>} : memref<2x128xbf16, #tpu.memory_space<vmem>>, vector<2x128xbf16>,
    return
  }
  func.func @transform_0(%arg0: i32) -> (i32, i32) {
    %c0_i32 = arith.constant 0 : i32
    %c0_i32_0 = arith.constant 0 : i32
    return %arg0, %c0_i32 : i32, i32
  }
  func.func @transform_1(%arg0: i32) -> (i32, i32) {
    %c0_i32 = arith.constant 0 : i32
    %c0_i32_0 = arith.constant 0 : i32
    %c0_i32_1 = arith.constant 0 : i32
    return %c0_i32, %c0_i32_0 : i32, i32
  }
  func.func @transform_2(%arg0: i32) -> (i32, i32) {
    %c0_i32 = arith.constant 0 : i32
    %c0_i32_0 = arith.constant 0 : i32
    %c0_i32_1 = arith.constant 0 : i32
    return %c0_i32, %c0_i32_0 : i32, i32
  }
  func.func @transform_3(%arg0: i32) -> (i32, i32) {
    %c0_i32 = arith.constant 0 : i32
    %c0_i32_0 = arith.constant 0 : i32
    %c0_i32_1 = arith.constant 0 : i32
    return %c0_i32, %c0_i32_0 : i32, i32
  }
  func.func @transform_4(%arg0: i32) -> (i32, i32) {
    %c0_i32 = arith.constant 0 : i32
    %c0_i32_0 = arith.constant 0 : i32
    %c0_i32_1 = arith.constant 0 : i32
    return %c0_i32, %c0_i32_0 : i32, i32
  }
  func.func @transform_5(%arg0: i32) -> (i32, i32) {
    %c0_i32 = arith.constant 0 : i32
    %c0_i32_0 = arith.constant 0 : i32
    return %arg0, %c0_i32 : i32, i32
  }
}

</mosaic_0001>

<bundles_post_ra>
// kernel: tpu_custom_call.1
= control target key start
LH: loop header
LB: loop body
LE: loop exit
PB: predicated region body
PF: predicated region fallthrough
CT: control target
= control target key end

     0   :  { %10 = vsyncpa [#allocation3], 0  ;;  %s3295_s0 = inlined_call_operand.hbm [shape: f32[2,3072], index: 0, kind: input, shape index: {}]   ;;  %s3296_s1 = inlined_call_operand.hbm [shape: bf16[3072,128], index: 1, kind: input, shape index: {}]   ;;  %s3297_s2 = inlined_call_operand.vmem [shape: f32[1,128], index: 2, kind: input, shape index: {}]   ;;  %s3298_s3 = inlined_call_operand.hbm [shape: bf16[128,128], index: 3, kind: input, shape index: {}]   ;;  %s3299_s4 = inlined_call_operand.vmem [shape: f32[1,128], index: 4, kind: input, shape index: {}]   ;;  %s3300_s5 = inlined_call_operand.hbm [shape: bf16[2,128], index: 5, kind: output, shape index: {}]  }
   0x1   :  { %11 = vsyncpa [#allocation6], 0 }
   0x2   :  { %12 = vsyncpa [#allocation4], 0  ;;  %s3182_s18 = smov [#allocation5]   ;;  %s3088_s22 = scalar_lea.hbm %s3296_s1, 24576 }
   0x3   :  { %s28_s19 = sshll.u32 %s3182_s18, 4  ;;  %p3089_p0 = scmp.ne.s32.totalorder %s3296_s1, %s3088_s22  ;;  %s29_s19 = int_to_ptr.vmem [resolvable:$true] %s28_s19 }
   0x4   :  { %p3092_p1 = scmp.lt.u32.totalorder %s3088_s22, %s3296_s1 }
   0x6   :  { %p3094_p2 = pnand %p3092_p1, %p3089_p0 }
   0x8   :  { %3097 = shalt.err (!%p3094_p2)
}
   0x9   :  { %s3098_s27 = scalar_lea.vmem %s29_s19, 24576  ;;  %p3103_p4 = scmp.lt.s32.totalorder %s29_s19, %s29_s19 }
   0xa   :  { %p3099_p3 = scmp.ne.s32.totalorder %s29_s19, %s3098_s27  ;;  %p3104_p5 = scmp.lt.s32.totalorder %s3098_s27, %s3098_s27 }
   0xc   :  { %p3105_p6 = por %p3104_p5, %p3103_p4 }
   0xe   :  { %p3106_p7 = pnand %p3105_p6, %p3099_p3 }
  0x10   :  { %3109 = shalt.err (!%p3106_p7)
}
  0x11   :  { %s3183_s28 = smov 64   ;;  %s3184_s29 = smov 4  }
  0x12   :  { %34 = dma.hbm_to_vmem [thread:$0]  %s3296_s1, 24576, %s29_s19, [#allocation6], %s3183_s28, %s3183_s28, %s3184_s29  }
  0x13   :  { %s3185_s7 = smov [#allocation2]   ;;  %s3186_s9 = smov [#allocation7]  }
  0x14   :  { %s19_s8 = sshll.u32 %s3185_s7, 4  ;;  %s42_s10 = sshll.u32 %s3186_s9, 4  ;;  %s20_s8 = int_to_ptr.vmem [resolvable:$true] %s19_s8  ;;  %s43_s10 = int_to_ptr.vmem [resolvable:$true] %s42_s10 }
  0x15   :  { %s3110_s13 = scalar_lea.hbm %s3295_s0, 768 }
  0x16   :  { %p3111_p8 = scmp.ne.s32.totalorder %s3295_s0, %s3110_s13  ;;  %p3114_p9 = scmp.lt.u32.totalorder %s3110_s13, %s3295_s0 }
  0x18   :  { %p3116_p10 = pnand %p3114_p9, %p3111_p8 }
  0x1a   :  { %3119 = shalt.err (!%p3116_p10)
}
  0x1b   :  { %s3120_s1 = scalar_lea.vmem %s20_s8, 768  ;;  %p3125_p12 = scmp.lt.s32.totalorder %s20_s8, %s20_s8 }
  0x1c   :  { %p3121_p11 = scmp.ne.s32.totalorder %s20_s8, %s3120_s1  ;;  %p3126_p13 = scmp.lt.s32.totalorder %s3120_s1, %s3120_s1 }
  0x1e   :  { %p3127_p0 = por %p3126_p13, %p3125_p12 }
  0x20   :  { %p3128_p1 = pnand %p3127_p0, %p3121_p11 }
  0x22   :  { %3131 = shalt.err (!%p3128_p1)
}
  0x23   :  { %22 = dma.hbm_to_vmem [thread:$0]  %s3295_s0, 768, %s20_s8, [#allocation3]  }
  0x24   :  { %s3132_s22 = scalar_lea.hbm %s3298_s3, 1024 }
  0x25   :  { %p3133_p2 = scmp.ne.s32.totalorder %s3298_s3, %s3132_s22  ;;  %p3136_p3 = scmp.lt.u32.totalorder %s3132_s22, %s3298_s3 }
  0x27   :  { %p3138_p4 = pnand %p3136_p3, %p3133_p2 }
  0x29   :  { %3141 = shalt.err (!%p3138_p4)
}
  0x2a   :  { %s3142_s27 = scalar_lea.vmem %s43_s10, 1024  ;;  %p3147_p6 = scmp.lt.s32.totalorder %s43_s10, %s43_s10 }
  0x2b   :  { %p3143_p5 = scmp.ne.s32.totalorder %s43_s10, %s3142_s27  ;;  %p3148_p7 = scmp.lt.s32.totalorder %s3142_s27, %s3142_s27 }
  0x2d   :  { %p3149_p8 = por %p3148_p7, %p3147_p6 }
  0x2f   :  { %p3150_p9 = pnand %p3149_p8, %p3143_p5 }
  0x31   :  { %3153 = shalt.err (!%p3150_p9)
}
  0x32   :  { %48 = dma.hbm_to_vmem [thread:$0]  %s3298_s3, 1024, %s43_s10, [#allocation6], %s3183_s28, %s3183_s28, %s3184_s29  }
  0x33   :  { %3176 = dma.done.wait [#allocation3], 768  }
  0x34   :  { %3177 = vsyncadd [#allocation3], 4294966528 }
  0x35   :  { %3178 = dma.done.wait [#allocation6], 25600  }
  0x36   :  { %3179 = vsyncadd [#allocation6], 4294941696  ;;  %v2882_v0 = vld [vmem:[#allocation5 + $0x40] sm:$0xff]   ;;  %v2886_v4 = vld [vmem:[#allocation5 + $0x48] sm:$0xff]   ;;  %v3187_v22 = vmov 1983009808   ;;  %v77_v24 = vlaneseq }
  0x37   :  { %v2883_v1 = vld [vmem:[#allocation5 + $0xc0] sm:$0xff]   ;;  %2580 = vmatprep.subr.bf16.mxu0 %v2882_v0  ;;  %v2887_v5 = vld [vmem:[#allocation5 + $0xc8] sm:$0xff]   ;;  %v2890_v8 = vld [vmem:[#allocation5 + $0x50] sm:$0xff]   ;;  %v75_v23 = vunpack.c.l.s4 %v3187_v22  ;;  %vm3189_vm0 = vmmov 0   ;;  %s3190_s6 = smov [#allocation8]  }
  0x38   :  { %v2884_v2 = vld [vmem:[#allocation5] sm:$0xff]   ;;  %2602 = vmatprep.subr.bf16.mxu1 %v2883_v1  ;;  %v2888_v6 = vld [vmem:[#allocation5 + $0x8] sm:$0xff]   ;;  %v2891_v9 = vld [vmem:[#allocation5 + $0xd0] sm:$0xff]   ;;  %v78_v30 = vshrl.u32 %v77_v24, 7  ;;  %s2368_s7 = sshll.u32 %s3190_s6, 4  ;;  %s2369_s7 = int_to_ptr.vmem [resolvable:$true] %s2368_s7 }
  0x39   :  { %v2885_v3 = vld [vmem:[#allocation5 + $0x80] sm:$0xff]   ;;  %2581 = vmatpush3.bf16.msra.mxu0 %v2884_v2  ;;  %v2889_v7 = vld [vmem:[#allocation5 + $0x88] sm:$0xff]   ;;  %v2892_v10 = vld [vmem:[#allocation5 + $0x10] sm:$0xff]   ;;  %v76_v29 = vunpack.c.0.s8 %v75_v23  ;;  %s3154_s8 = scalar_lea.vmem %s2369_s7, 16  ;;  %s3158_s9 = scalar_lea.vmem %s2369_s7, 32 }
  0x3a   :  { %2603 = vmatpush3.bf16.msra.mxu1 %v2885_v3  ;;  %2582 = vmatprep.subr.bf16.mxu0 %v2886_v4  ;;  %v2893_v11 = vld [vmem:[#allocation5 + $0x90] sm:$0xff]   ;;  %v2894_v12 = vld [vmem:[#allocation5 + $0x58] sm:$0xff]   ;;  %v2898_v16 = vld [vmem:[#allocation5 + $0x60] sm:$0xff]   ;;  %p3155_p10 = scmp.ne.s32.totalorder %s2369_s7, %s3154_s8  ;;  %p3159_p11 = scmp.lt.s32.totalorder %s2369_s7, %s2369_s7 }
  0x3b   :  { %2604 = vmatprep.subr.bf16.mxu1 %v2887_v5  ;;  %v2895_v13 = vld [vmem:[#allocation5 + $0xd8] sm:$0xff]   ;;  %v2899_v17 = vld [vmem:[#allocation5 + $0xe0] sm:$0xff]   ;;  %v2902_v20 = vld [vmem:[#allocation5 + $0x68] sm:$0xff]   ;;  %v3263_v35 = vsub.s32 %v76_v29, %v78_v30  ;;  %p3160_p12 = scmp.lt.s32.totalorder %s3158_s9, %s3154_s8 }
  0x3c   :  { %v2896_v14 = vld [vmem:[#allocation5 + $0x18] sm:$0xff]   ;;  %v2900_v18 = vld [vmem:[#allocation5 + $0x20] sm:$0xff]   ;;  %v2903_v21 = vld [vmem:[#allocation5 + $0xe8] sm:$0xff]  }
  0x3d   :  { %2583 = vmatpush3.bf16.msra.mxu0 %v2888_v6  ;;  %v2897_v15 = vld [vmem:[#allocation5 + $0x98] sm:$0xff]   ;;  %v2901_v19 = vld [vmem:[#allocation5 + $0xa0] sm:$0xff]   ;;  %v2904_v25 = vld [vmem:[#allocation5 + $0x28] sm:$0xff]   ;;  %p3161_p13 = por %p3160_p12, %p3159_p11 }
  0x3e   :  { %2605 = vmatpush3.bf16.msra.mxu1 %v2889_v7  ;;  %2584 = vmatprep.subr.bf16.mxu0 %v2890_v8  ;;  %v2905_v26 = vld [vmem:[#allocation5 + $0xa8] sm:$0xff]   ;;  %v2906_v27 = vld [vmem:[#allocation5 + $0x70] sm:$0xff]   ;;  %v2910_v33 = vld [vmem:[#allocation5 + $0x78] sm:$0xff]  }
  0x3f   :  { %2606 = vmatprep.subr.bf16.mxu1 %v2891_v9  ;;  %v2907_v28 = vld [vmem:[#allocation5 + $0xf0] sm:$0xff]   ;;  %v2911_v34 = vld [vmem:[#allocation5 + $0xf8] sm:$0xff]   ;;  %v2915_v41 = vld [vmem:[#allocation5 + $0x140] sm:$0xff]   ;;  %p3162_p0 = pnand %p3161_p13, %p3155_p10 }
  0x40   :  { %v2908_v31 = vld [vmem:[#allocation5 + $0x30] sm:$0xff]   ;;  %v2912_v36 = vld [vmem:[#allocation5 + $0x38] sm:$0xff]   ;;  %v2916_v42 = vld [vmem:[#allocation5 + $0x1c0] sm:$0xff]  }
  0x41   :  { %2585 = vmatpush3.bf16.msra.mxu0 %v2892_v10  ;;  %v2909_v32 = vld [vmem:[#allocation5 + $0xb0] sm:$0xff]   ;;  %v2913_v37 = vld [vmem:[#allocation5 + $0xb8] sm:$0xff]   ;;  %v2917_v46 = vld [vmem:[#allocation5 + $0x100] sm:$0xff]  }
  0x42   :  { %2607 = vmatpush3.bf16.msra.mxu1 %v2893_v11  ;;  %2586 = vmatprep.subr.bf16.mxu0 %v2894_v12  ;;  %v61_v38 = vld [vmem:[#allocation2] sm:$0xff]  ;;  %v2918_v49 = vld [vmem:[#allocation5 + $0x180] sm:$0xff]   ;;  %v2919_v51 = vld [vmem:[#allocation5 + $0x148] sm:$0xff]  }
  0x43   :  { %2608 = vmatprep.subr.bf16.mxu1 %v2895_v13  ;;  %v80_v39 = vrot.slane %v61_v38, %v3263_v35  ;;  %v73_v40 = vcombine.high %v61_v38, %v61_v38  ;;  %v2920_v53 = vld [vmem:[#allocation5 + $0x1c8] sm:$0xff]   ;;  %v2923_v56 = vld [vmem:[#allocation5 + $0x150] sm:$0xff]   ;;  %v2927_v60 = vld [vmem:[#allocation5 + $0x158] sm:$0xff]  }
  0x44   :  { %v2921_v54 = vld [vmem:[#allocation5 + $0x108] sm:$0xff]   ;;  %v2924_v57 = vld [vmem:[#allocation5 + $0x1d0] sm:$0xff]   ;;  %v2928_v61 = vld [vmem:[#allocation5 + $0x1d8] sm:$0xff]  }
  0x45   :  { %2587 = vmatpush3.bf16.msra.mxu0 %v2896_v14  ;;  %v88_v43 = vcombine.high %v80_v39, %v80_v39  ;;  %v87_v44 = vrot.slane %v73_v40, %v3263_v35  ;;  %v199_v45 = vpack.c.bf16 %v80_v39, %v80_v39  ;;  %v2922_v55 = vld [vmem:[#allocation5 + $0x188] sm:$0xff]   ;;  %v2925_v58 = vld [vmem:[#allocation5 + $0x110] sm:$0xff]   ;;  %v2929_v62 = vld [vmem:[#allocation5 + $0x118] sm:$0xff]  }
  0x46   :  { %2609 = vmatpush3.bf16.msra.mxu1 %v2897_v15  ;;  %2588 = vmatprep.subr.bf16.mxu0 %v2898_v16  ;;  %v2926_v59 = vld [vmem:[#allocation5 + $0x190] sm:$0xff]   ;;  %v2930_v63 = vld [vmem:[#allocation5 + $0x198] sm:$0xff]   ;;  %v2931_v0 = vld [vmem:[#allocation5 + $0x160] sm:$0xff]  }
  0x47   :  { %2610 = vmatprep.subr.bf16.mxu1 %v2899_v17  ;;  %v200_v47 = vpack.c.bf16 %v88_v43, %v88_v43  ;;  %v89_v48 = vcombine.high %v87_v44, %v87_v44  ;;  %v201_v50 = vpack.c.bf16 %v87_v44, %v87_v44  ;;  %v2932_v1 = vld [vmem:[#allocation5 + $0x1e0] sm:$0xff]   ;;  %v2935_v4 = vld [vmem:[#allocation5 + $0x168] sm:$0xff]   ;;  %v2939_v8 = vld [vmem:[#allocation5 + $0x170] sm:$0xff]  }
  0x48   :  { %v2933_v2 = vld [vmem:[#allocation5 + $0x120] sm:$0xff]   ;;  %v2936_v5 = vld [vmem:[#allocation5 + $0x1e8] sm:$0xff]   ;;  %v2940_v9 = vld [vmem:[#allocation5 + $0x1f0] sm:$0xff]  }
  0x49   :  { %2589 = vmatpush3.bf16.msra.mxu0 %v2900_v18  ;;  %1798 = vmatprep.mubr.bf16.mxu0 %v200_v47  ;;  %v202_v52 = vpack.c.bf16 %v89_v48, %v89_v48  ;;  %v2934_v3 = vld [vmem:[#allocation5 + $0x1a0] sm:$0xff]   ;;  %v2937_v6 = vld [vmem:[#allocation5 + $0x128] sm:$0xff]   ;;  %v2941_v10 = vld [vmem:[#allocation5 + $0x130] sm:$0xff]  }
  0x4a   :  { %2611 = vmatpush3.bf16.msra.mxu1 %v2901_v19  ;;  %2590 = vmatprep.subr.bf16.mxu0 %v2902_v20  ;;  %v2938_v7 = vld [vmem:[#allocation5 + $0x1a8] sm:$0xff]   ;;  %v2942_v11 = vld [vmem:[#allocation5 + $0x1b0] sm:$0xff]   ;;  %v2943_v12 = vld [vmem:[#allocation5 + $0x178] sm:$0xff]  }
  0x4b   :  { %2612 = vmatprep.subr.bf16.mxu1 %v2903_v21  ;;  %1838 = vmatprep.mubr.bf16.mxu1 %v202_v52  ;;  %v2944_v13 = vld [vmem:[#allocation5 + $0x1f8] sm:$0xff]   ;;  %v2948_v19 = vld [vmem:[#allocation5 + $0x240] sm:$0xff]   ;;  %v2952_v29 = vld [vmem:[#allocation5 + $0x248] sm:$0xff]  }
  0x4c   :  { %v2945_v14 = vld [vmem:[#allocation5 + $0x138] sm:$0xff]   ;;  %v2949_v22 = vld [vmem:[#allocation5 + $0x2c0] sm:$0xff]   ;;  %v2959_v38 = vld [vmem:[#allocation5 + $0x290] sm:$0xff]  }
  0x4d   :  { %2591 = vmatpush3.bf16.msra.mxu0 %v2904_v25  ;;  %v62_v15 = vld [vmem:[#allocation2 + $0x8] sm:$0xff]  ;;  %v2950_v24 = vld [vmem:[#allocation5 + $0x200] sm:$0xff]   ;;  %v2968_v47 = vld [vmem:[#allocation5 + $0x268] sm:$0xff]  }
  0x4e   :  { %2613 = vmatpush3.bf16.msra.mxu1 %v2905_v26  ;;  %2592 = vmatprep.subr.bf16.mxu0 %v2906_v27  ;;  %v2946_v16 = vld [vmem:[#allocation5 + $0x1b8] sm:$0xff]   ;;  %v97_v17 = vrot.slane %v62_v15, %v3263_v35  ;;  %v90_v18 = vcombine.high %v62_v15, %v62_v15  ;;  %v2951_v27 = vld [vmem:[#allocation5 + $0x280] sm:$0xff]   ;;  %v2969_v48 = vld [vmem:[#allocation5 + $0x2e8] sm:$0xff]  }
  0x4f   :  { %2614 = vmatprep.subr.bf16.mxu1 %v2907_v28  ;;  %v2960_v39 = vld [vmem:[#allocation5 + $0x258] sm:$0xff]   ;;  %v2964_v43 = vld [vmem:[#allocation5 + $0x260] sm:$0xff]   ;;  %v2973_v52 = vld [vmem:[#allocation5 + $0x2f0] sm:$0xff]  }
  0x50   :  { %v105_v20 = vcombine.high %v97_v17, %v97_v17  ;;  %v104_v21 = vrot.slane %v90_v18, %v3263_v35  ;;  %v203_v23 = vpack.c.bf16 %v97_v17, %v97_v17  ;;  %v2961_v40 = vld [vmem:[#allocation5 + $0x2d8] sm:$0xff]   ;;  %v2965_v44 = vld [vmem:[#allocation5 + $0x2e0] sm:$0xff]   ;;  %v2991_v15 = vld [vmem:[#allocation5 + $0x310] sm:$0xff]  }
  0x51   :  { %2593 = vmatpush3.bf16.msra.mxu0 %v2908_v31  ;;  %v2953_v31 = vld [vmem:[#allocation5 + $0x2c8] sm:$0xff]   ;;  %v2993_v17 = vld [vmem:[#allocation5 + $0x358] sm:$0xff]  }
  0x52   :  { %2615 = vmatpush3.bf16.msra.mxu1 %v2909_v32  ;;  %2594 = vmatprep.subr.bf16.mxu0 %v2910_v33  ;;  %v204_v25 = vpack.c.bf16 %v105_v20, %v105_v20  ;;  %v106_v26 = vcombine.high %v104_v21, %v104_v21  ;;  %v205_v28 = vpack.c.bf16 %v104_v21, %v104_v21  ;;  %v2954_v32 = vld [vmem:[#allocation5 + $0x208] sm:$0xff]   ;;  %v2994_v18 = vld [vmem:[#allocation5 + $0x3d8] sm:$0xff]   ;;  %v2997_v21 = vld [vmem:[#allocation5 + $0x360] sm:$0xff]  }
  0x53   :  { %2616 = vmatprep.subr.bf16.mxu1 %v2911_v34  ;;  %v2955_v33 = vld [vmem:[#allocation5 + $0x288] sm:$0xff]   ;;  %v2956_v34 = vld [vmem:[#allocation5 + $0x250] sm:$0xff]   ;;  %v2996_v20 = vld [vmem:[#allocation5 + $0x398] sm:$0xff]  }
  0x54   :  { %v206_v30 = vpack.c.bf16 %v106_v26, %v106_v26  ;;  %v3002_v26 = vld [vmem:[#allocation5 + $0x3e8] sm:$0xff]  }
  0x55   :  { %2595 = vmatpush3.bf16.msra.mxu0 %v2912_v36  ;;  %v2957_v36 = vld [vmem:[#allocation5 + $0x2d0] sm:$0xff]  }
  0x56   :  { %2617 = vmatpush3.bf16.msra.mxu1 %v2913_v37  ;;  %2624 = vmatprep.subr.bf16.mxu0 %v2915_v41  ;;  %v2958_v37 = vld [vmem:[#allocation5 + $0x210] sm:$0xff]   ;;  %v2962_v41 = vld [vmem:[#allocation5 + $0x218] sm:$0xff]  }
  0x57   :  { %2646 = vmatprep.subr.bf16.mxu1 %v2916_v42  ;;  %v2963_v42 = vld [vmem:[#allocation5 + $0x298] sm:$0xff]  }
  0x58   :  { %1799 = vmatmul.mubr.bf16.vlgmr.msra.gmra.mrb[0].mxu0 %v199_v45  ;;  %v2966_v45 = vld [vmem:[#allocation5 + $0x220] sm:$0xff]  }
  0x59   :  { %2625 = vmatpush3.bf16.msra.mxu0 %v2917_v46  ;;  %1839 = vmatmul.mubr.bf16.vlgmr.msra.gmra.mrb[0].mxu1 %v201_v50  ;;  %v2967_v46 = vld [vmem:[#allocation5 + $0x2a0] sm:$0xff]   ;;  %v2971_v50 = vld [vmem:[#allocation5 + $0x2a8] sm:$0xff]  }
  0x5a   :  { %2626 = vmatprep.subr.bf16.mxu0 %v2919_v51  ;;  %2647 = vmatpush3.bf16.msra.mxu1 %v2918_v49  ;;  %v2970_v49 = vld [vmem:[#allocation5 + $0x228] sm:$0xff]   ;;  %v2972_v51 = vld [vmem:[#allocation5 + $0x270] sm:$0xff]  }
  0x5b   :  { %2648 = vmatprep.subr.bf16.mxu1 %v2920_v53  ;;  %1878 = vmatprep.mubr.bf16.mxu0 %v204_v25  ;;  %v2974_v53 = vld [vmem:[#allocation5 + $0x230] sm:$0xff]   ;;  %v3001_v25 = vld [vmem:[#allocation5 + $0x368] sm:$0xff]  }
  0x5c   :  { %1918 = vmatprep.mubr.bf16.mxu1 %v206_v30  ;;  %v3006_v30 = vld [vmem:[#allocation5 + $0x3f0] sm:$0xff]  }
  0x5d   :  { %2627 = vmatpush3.bf16.msra.mxu0 %v2921_v54  ;;  %v2975_v54 = vld [vmem:[#allocation5 + $0x2b0] sm:$0xff]  }
  0x5e   :  { %2628 = vmatprep.subr.bf16.mxu0 %v2923_v56  ;;  %2649 = vmatpush3.bf16.msra.mxu1 %v2922_v55  ;;  %v2976_v55 = vld [vmem:[#allocation5 + $0x278] sm:$0xff]  }
  0x5f   :  { %2650 = vmatprep.subr.bf16.mxu1 %v2924_v57  ;;  %v2977_v56 = vld [vmem:[#allocation5 + $0x2f8] sm:$0xff]  }
  0x60   :  { %v2978_v57 = vld [vmem:[#allocation5 + $0x238] sm:$0xff]  }
  0x61   :  { %2629 = vmatpush3.bf16.msra.mxu0 %v2925_v58  ;;  %v63_v58 = vld [vmem:[#allocation2 + $0x10] sm:$0xff] }
  0x62   :  { %2630 = vmatprep.subr.bf16.mxu0 %v2927_v60  ;;  %2651 = vmatpush3.bf16.msra.mxu1 %v2926_v59  ;;  %v2979_v59 = vld [vmem:[#allocation5 + $0x2b8] sm:$0xff]   ;;  %v114_v60 = vrot.slane %v63_v58, %v3263_v35 }
  0x63   :  { %2652 = vmatprep.subr.bf16.mxu1 %v2928_v61  ;;  %v107_v61 = vcombine.high %v63_v58, %v63_v58  ;;  %v3024_v58 = vld [vmem:[#allocation5 + $0x410] sm:$0xff]  }
  0x65   :  { %2631 = vmatpush3.bf16.msra.mxu0 %v2929_v62  ;;  %v2981_v62 = vld [vmem:[#allocation5 + $0x340] sm:$0xff]  }
  0x66   :  { %2632 = vmatprep.subr.bf16.mxu0 %v2931_v0  ;;  %2653 = vmatpush3.bf16.msra.mxu1 %v2930_v63  ;;  %v122_v63 = vcombine.high %v114_v60, %v114_v60  ;;  %v121_v0 = vrot.slane %v107_v61, %v3263_v35  ;;  %v3027_v61 = vld [vmem:[#allocation5 + $0x4d8] sm:$0xff]  }
  0x67   :  { %2654 = vmatprep.subr.bf16.mxu1 %v2932_v1  ;;  %v2982_v1 = vld [vmem:[#allocation5 + $0x3c0] sm:$0xff]  }
  0x69   :  { %2633 = vmatpush3.bf16.msra.mxu0 %v2933_v2  ;;  %v207_v2 = vpack.c.bf16 %v114_v60, %v114_v60  ;;  %v3026_v60 = vld [vmem:[#allocation5 + $0x458] sm:$0xff]  }
  0x6a   :  { %2634 = vmatprep.subr.bf16.mxu0 %v2935_v4  ;;  %2655 = vmatpush3.bf16.msra.mxu1 %v2934_v3  ;;  %v2983_v3 = vld [vmem:[#allocation5 + $0x300] sm:$0xff]   ;;  %v208_v4 = vpack.c.bf16 %v122_v63, %v122_v63  ;;  %v3029_v63 = vld [vmem:[#allocation5 + $0x498] sm:$0xff]  }
  0x6b   :  { %2656 = vmatprep.subr.bf16.mxu1 %v2936_v5  ;;  %v123_v5 = vcombine.high %v121_v0, %v121_v0 }
  0x6d   :  { %2635 = vmatpush3.bf16.msra.mxu0 %v2937_v6  ;;  %v2984_v6 = vld [vmem:[#allocation5 + $0x380] sm:$0xff]  }
  0x6e   :  { %2636 = vmatprep.subr.bf16.mxu0 %v2939_v8  ;;  %2657 = vmatpush3.bf16.msra.mxu1 %v2938_v7  ;;  %v209_v7 = vpack.c.bf16 %v121_v0, %v121_v0  ;;  %v2985_v8 = vld [vmem:[#allocation5 + $0x348] sm:$0xff]   ;;  %v3030_v0 = vld [vmem:[#allocation5 + $0x460] sm:$0xff]  }
  0x6f   :  { %2658 = vmatprep.subr.bf16.mxu1 %v2940_v9  ;;  %v210_v9 = vpack.c.bf16 %v123_v5, %v123_v5  ;;  %v3035_v5 = vld [vmem:[#allocation5 + $0x4e8] sm:$0xff]  }
  0x71   :  { %2637 = vmatpush3.bf16.msra.mxu0 %v2941_v10  ;;  %v2986_v10 = vld [vmem:[#allocation5 + $0x3c8] sm:$0xff]  }
  0x72   :  { %2638 = vmatprep.subr.bf16.mxu0 %v2943_v12  ;;  %2659 = vmatpush3.bf16.msra.mxu1 %v2942_v11  ;;  %v2987_v11 = vld [vmem:[#allocation5 + $0x308] sm:$0xff]  }
  0x73   :  { %2660 = vmatprep.subr.bf16.mxu1 %v2944_v13  ;;  %v2988_v12 = vld [vmem:[#allocation5 + $0x388] sm:$0xff]   ;;  %v2989_v13 = vld [vmem:[#allocation5 + $0x350] sm:$0xff]  }
  0x75   :  { %2639 = vmatpush3.bf16.msra.mxu0 %v2945_v14  ;;  %v2990_v14 = vld [vmem:[#allocation5 + $0x3d0] sm:$0xff]  }
  0x76   :  { %2668 = vmatprep.subr.bf16.mxu0 %v2948_v19  ;;  %2661 = vmatpush3.bf16.msra.mxu1 %v2946_v16  ;;  %v2992_v16 = vld [vmem:[#allocation5 + $0x390] sm:$0xff]   ;;  %v2995_v19 = vld [vmem:[#allocation5 + $0x318] sm:$0xff]  }
  0x77   :  { %2690 = vmatprep.subr.bf16.mxu1 %v2949_v22  ;;  %v2998_v22 = vld [vmem:[#allocation5 + $0x3e0] sm:$0xff]  }
  0x78   :  { %1879 = vmatmul.mubr.bf16.vlgmr.msra.gmra.mrb[4].mxu0 %v203_v23  ;;  %v2999_v23 = vld [vmem:[#allocation5 + $0x320] sm:$0xff]  }
  0x79   :  { %2669 = vmatpush3.bf16.msra.mxu0 %v2950_v24  ;;  %1919 = vmatmul.mubr.bf16.vlgmr.msra.gmra.mrb[4].mxu1 %v205_v28  ;;  %v3000_v24 = vld [vmem:[#allocation5 + $0x3a0] sm:$0xff]   ;;  %v3004_v28 = vld [vmem:[#allocation5 + $0x3a8] sm:$0xff]  }
  0x7a   :  { %2670 = vmatprep.subr.bf16.mxu0 %v2952_v29  ;;  %2691 = vmatpush3.bf16.msra.mxu1 %v2951_v27  ;;  %v3003_v27 = vld [vmem:[#allocation5 + $0x328] sm:$0xff]   ;;  %v3005_v29 = vld [vmem:[#allocation5 + $0x370] sm:$0xff]  }
  0x7b   :  { %2692 = vmatprep.subr.bf16.mxu1 %v2953_v31  ;;  %1958 = vmatprep.mubr.bf16.mxu0 %v208_v4  ;;  %v3007_v31 = vld [vmem:[#allocation5 + $0x330] sm:$0xff]   ;;  %v3034_v4 = vld [vmem:[#allocation5 + $0x468] sm:$0xff]  }
  0x7c   :  { %1998 = vmatprep.mubr.bf16.mxu1 %v210_v9  ;;  %v3039_v9 = vld [vmem:[#allocation5 + $0x4f0] sm:$0xff]  }
  0x7d   :  { %2671 = vmatpush3.bf16.msra.mxu0 %v2954_v32  ;;  %v3008_v32 = vld [vmem:[#allocation5 + $0x3b0] sm:$0xff]  }
  0x7e   :  { %2672 = vmatprep.subr.bf16.mxu0 %v2956_v34  ;;  %2693 = vmatpush3.bf16.msra.mxu1 %v2955_v33  ;;  %v3009_v33 = vld [vmem:[#allocation5 + $0x378] sm:$0xff]  }
  0x7f   :  { %2694 = vmatprep.subr.bf16.mxu1 %v2957_v36  ;;  %v3010_v34 = vld [vmem:[#allocation5 + $0x3f8] sm:$0xff]  }
  0x80   :  { %v3011_v36 = vld [vmem:[#allocation5 + $0x338] sm:$0xff]  }
  0x81   :  { %2673 = vmatpush3.bf16.msra.mxu0 %v2958_v37  ;;  %v64_v37 = vld [vmem:[#allocation2 + $0x18] sm:$0xff] }
  0x82   :  { %2674 = vmatprep.subr.bf16.mxu0 %v2960_v39  ;;  %2695 = vmatpush3.bf16.msra.mxu1 %v2959_v38  ;;  %v131_v38 = vrot.slane %v64_v37, %v3263_v35  ;;  %v124_v39 = vcombine.high %v64_v37, %v64_v37  ;;  %v3057_v37 = vld [vmem:[#allocation5 + $0x510] sm:$0xff]  }
  0x83   :  { %2696 = vmatprep.subr.bf16.mxu1 %v2961_v40  ;;  %v3014_v40 = vld [vmem:[#allocation5 + $0x440] sm:$0xff]  }
  0x85   :  { %2675 = vmatpush3.bf16.msra.mxu0 %v2962_v41  ;;  %v3012_v41 = vld [vmem:[#allocation5 + $0x3b8] sm:$0xff]  }
  0x86   :  { %2676 = vmatprep.subr.bf16.mxu0 %v2964_v43  ;;  %2697 = vmatpush3.bf16.msra.mxu1 %v2963_v42  ;;  %v139_v42 = vcombine.high %v131_v38, %v131_v38  ;;  %v138_v43 = vrot.slane %v124_v39, %v3263_v35  ;;  %v3059_v39 = vld [vmem:[#allocation5 + $0x558] sm:$0xff]  }
  0x87   :  { %2698 = vmatprep.subr.bf16.mxu1 %v2965_v44  ;;  %v3015_v44 = vld [vmem:[#allocation5 + $0x4c0] sm:$0xff]  }
  0x89   :  { %2677 = vmatpush3.bf16.msra.mxu0 %v2966_v45  ;;  %v211_v45 = vpack.c.bf16 %v131_v38, %v131_v38  ;;  %v3058_v38 = vld [vmem:[#allocation5 + $0x590] sm:$0xff]  }
  0x8a   :  { %2678 = vmatprep.subr.bf16.mxu0 %v2968_v47  ;;  %2699 = vmatpush3.bf16.msra.mxu1 %v2967_v46  ;;  %v3016_v46 = vld [vmem:[#allocation5 + $0x400] sm:$0xff]   ;;  %v212_v47 = vpack.c.bf16 %v139_v42, %v139_v42  ;;  %v3062_v42 = vld [vmem:[#allocation5 + $0x598] sm:$0xff]  }
  0x8b   :  { %2700 = vmatprep.subr.bf16.mxu1 %v2969_v48  ;;  %v140_v48 = vcombine.high %v138_v43, %v138_v43 }
  0x8d   :  { %2679 = vmatpush3.bf16.msra.mxu0 %v2970_v49  ;;  %v3017_v49 = vld [vmem:[#allocation5 + $0x480] sm:$0xff]  }
  0x8e   :  { %2680 = vmatprep.subr.bf16.mxu0 %v2972_v51  ;;  %2701 = vmatpush3.bf16.msra.mxu1 %v2971_v50  ;;  %v213_v50 = vpack.c.bf16 %v138_v43, %v138_v43  ;;  %v3018_v51 = vld [vmem:[#allocation5 + $0x448] sm:$0xff]   ;;  %v3063_v43 = vld [vmem:[#allocation5 + $0x560] sm:$0xff]  }
  0x8f   :  { %2702 = vmatprep.subr.bf16.mxu1 %v2973_v52  ;;  %v214_v52 = vpack.c.bf16 %v140_v48, %v140_v48  ;;  %v3068_v48 = vld [vmem:[#allocation5 + $0x5e8] sm:$0xff]  }
  0x91   :  { %2681 = vmatpush3.bf16.msra.mxu0 %v2974_v53  ;;  %v3019_v53 = vld [vmem:[#allocation5 + $0x4c8] sm:$0xff]  }
  0x92   :  { %2682 = vmatprep.subr.bf16.mxu0 %v2976_v55  ;;  %2703 = vmatpush3.bf16.msra.mxu1 %v2975_v54  ;;  %v3020_v54 = vld [vmem:[#allocation5 + $0x408] sm:$0xff]  }
  0x93   :  { %2704 = vmatprep.subr.bf16.mxu1 %v2977_v56  ;;  %v3021_v55 = vld [vmem:[#allocation5 + $0x488] sm:$0xff]   ;;  %v3022_v56 = vld [vmem:[#allocation5 + $0x450] sm:$0xff]  }
  0x95   :  { %2683 = vmatpush3.bf16.msra.mxu0 %v2978_v57  ;;  %v3023_v57 = vld [vmem:[#allocation5 + $0x4d0] sm:$0xff]  }
  0x96   :  { %2712 = vmatprep.subr.bf16.mxu0 %v2981_v62  ;;  %2705 = vmatpush3.bf16.msra.mxu1 %v2979_v59  ;;  %v3025_v59 = vld [vmem:[#allocation5 + $0x490] sm:$0xff]   ;;  %v3028_v62 = vld [vmem:[#allocation5 + $0x418] sm:$0xff]  }
  0x97   :  { %2734 = vmatprep.subr.bf16.mxu1 %v2982_v1  ;;  %v3031_v1 = vld [vmem:[#allocation5 + $0x4e0] sm:$0xff]  }
  0x98   :  { %1959 = vmatmul.mubr.bf16.vlgmr.msra.gmra.mrb[8].mxu0 %v207_v2  ;;  %v3032_v2 = vld [vmem:[#allocation5 + $0x420] sm:$0xff]  }
  0x99   :  { %2713 = vmatpush3.bf16.msra.mxu0 %v2983_v3  ;;  %1999 = vmatmul.mubr.bf16.vlgmr.msra.gmra.mrb[8].mxu1 %v209_v7  ;;  %v3033_v3 = vld [vmem:[#allocation5 + $0x4a0] sm:$0xff]   ;;  %v3037_v7 = vld [vmem:[#allocation5 + $0x4a8] sm:$0xff]  }
  0x9a   :  { %2714 = vmatprep.subr.bf16.mxu0 %v2985_v8  ;;  %2735 = vmatpush3.bf16.msra.mxu1 %v2984_v6  ;;  %v3036_v6 = vld [vmem:[#allocation5 + $0x428] sm:$0xff]   ;;  %v3038_v8 = vld [vmem:[#allocation5 + $0x470] sm:$0xff]  }
  0x9b   :  { %2736 = vmatprep.subr.bf16.mxu1 %v2986_v10  ;;  %2038 = vmatprep.mubr.bf16.mxu0 %v212_v47  ;;  %v3040_v10 = vld [vmem:[#allocation5 + $0x430] sm:$0xff]   ;;  %v3067_v47 = vld [vmem:[#allocation5 + $0x568] sm:$0xff]  }
  0x9c   :  { %2078 = vmatprep.mubr.bf16.mxu1 %v214_v52  ;;  %v3072_v52 = vld [vmem:[#allocation5 + $0x5f0] sm:$0xff]  }
  0x9d   :  { %2715 = vmatpush3.bf16.msra.mxu0 %v2987_v11  ;;  %v3041_v11 = vld [vmem:[#allocation5 + $0x4b0] sm:$0xff]  }
  0x9e   :  { %2716 = vmatprep.subr.bf16.mxu0 %v2989_v13  ;;  %2737 = vmatpush3.bf16.msra.mxu1 %v2988_v12  ;;  %v3042_v12 = vld [vmem:[#allocation5 + $0x478] sm:$0xff]  }
  0x9f   :  { %2738 = vmatprep.subr.bf16.mxu1 %v2990_v14  ;;  %v3043_v13 = vld [vmem:[#allocation5 + $0x4f8] sm:$0xff]  }
  0xa0   :  { %v3044_v14 = vld [vmem:[#allocation5 + $0x438] sm:$0xff]  }
  0xa1   :  { %2717 = vmatpush3.bf16.msra.mxu0 %v2991_v15  ;;  %v65_v15 = vld [vmem:[#allocation2 + $0x20] sm:$0xff] }
  0xa2   :  { %2718 = vmatprep.subr.bf16.mxu0 %v2993_v17  ;;  %2739 = vmatpush3.bf16.msra.mxu1 %v2992_v16  ;;  %v3045_v16 = vld [vmem:[#allocation5 + $0x4b8] sm:$0xff]   ;;  %v148_v17 = vrot.slane %v65_v15, %v3263_v35 }
  0xa3   :  { %2740 = vmatprep.subr.bf16.mxu1 %v2994_v18  ;;  %v141_v18 = vcombine.high %v65_v15, %v65_v15 }
  0xa5   :  { %2719 = vmatpush3.bf16.msra.mxu0 %v2995_v19  ;;  %v3047_v19 = vld [vmem:[#allocation5 + $0x540] sm:$0xff]  }
  0xa6   :  { %2720 = vmatprep.subr.bf16.mxu0 %v2997_v21  ;;  %2741 = vmatpush3.bf16.msra.mxu1 %v2996_v20  ;;  %v156_v20 = vcombine.high %v148_v17, %v148_v17  ;;  %v155_v21 = vrot.slane %v141_v18, %v3263_v35  ;;  %v3188_v18 = vmov 0.0  }
  0xa7   :  { %2742 = vmatprep.subr.bf16.mxu1 %v2998_v22  ;;  %v3048_v22 = vld [vmem:[#allocation5 + $0x5c0] sm:$0xff]  }
  0xa9   :  { %2721 = vmatpush3.bf16.msra.mxu0 %v2999_v23  ;;  %v215_v23 = vpack.c.bf16 %v148_v17, %v148_v17  ;;  %v3080_v17 = vld [vmem:[#allocation7] sm:$0xff]  }
  0xaa   :  { %2722 = vmatprep.subr.bf16.mxu0 %v3001_v25  ;;  %2743 = vmatpush3.bf16.msra.mxu1 %v3000_v24  ;;  %v3049_v24 = vld [vmem:[#allocation5 + $0x500] sm:$0xff]   ;;  %v216_v25 = vpack.c.bf16 %v156_v20, %v156_v20  ;;  %v3082_v20 = vld [vmem:[#allocation7 + $0x10] sm:$0xff]  }
  0xab   :  { %2744 = vmatprep.subr.bf16.mxu1 %v3002_v26  ;;  %v157_v26 = vcombine.high %v155_v21, %v155_v21 }
  0xad   :  { %2723 = vmatpush3.bf16.msra.mxu0 %v3003_v27  ;;  %v3050_v27 = vld [vmem:[#allocation5 + $0x580] sm:$0xff]  }
  0xae   :  { %2724 = vmatprep.subr.bf16.mxu0 %v3005_v29  ;;  %2745 = vmatpush3.bf16.msra.mxu1 %v3004_v28  ;;  %v217_v28 = vpack.c.bf16 %v155_v21, %v155_v21  ;;  %v3051_v29 = vld [vmem:[#allocation5 + $0x548] sm:$0xff]   ;;  %v3083_v21 = vld [vmem:[#allocation7 + $0x18] sm:$0xff]  }
  0xaf   :  { %2746 = vmatprep.subr.bf16.mxu1 %v3006_v30  ;;  %v218_v30 = vpack.c.bf16 %v157_v26, %v157_v26 }
  0xb1   :  { %2725 = vmatpush3.bf16.msra.mxu0 %v3007_v31  ;;  %v3052_v31 = vld [vmem:[#allocation5 + $0x5c8] sm:$0xff]  }
  0xb2   :  { %2726 = vmatprep.subr.bf16.mxu0 %v3009_v33  ;;  %2747 = vmatpush3.bf16.msra.mxu1 %v3008_v32  ;;  %v3053_v32 = vld [vmem:[#allocation5 + $0x508] sm:$0xff]  }
  0xb3   :  { %2748 = vmatprep.subr.bf16.mxu1 %v3010_v34  ;;  %v3054_v33 = vld [vmem:[#allocation5 + $0x588] sm:$0xff]   ;;  %v3055_v34 = vld [vmem:[#allocation5 + $0x550] sm:$0xff]  }
  0xb5   :  { %2727 = vmatpush3.bf16.msra.mxu0 %v3011_v36  ;;  %v3056_v36 = vld [vmem:[#allocation5 + $0x5d0] sm:$0xff]  }
  0xb6   :  { %2756 = vmatprep.subr.bf16.mxu0 %v3014_v40  ;;  %2749 = vmatpush3.bf16.msra.mxu1 %v3012_v41  ;;  %v3060_v40 = vld [vmem:[#allocation5 + $0x5d8] sm:$0xff]  }
  0xb7   :  { %2778 = vmatprep.subr.bf16.mxu1 %v3015_v44  ;;  %v3061_v41 = vld [vmem:[#allocation5 + $0x518] sm:$0xff]   ;;  %v3064_v44 = vld [vmem:[#allocation5 + $0x5e0] sm:$0xff]  }
  0xb8   :  { %2039 = vmatmul.mubr.bf16.vlgmr.msra.gmra.mrb[12].mxu0 %v211_v45  ;;  %v3065_v45 = vld [vmem:[#allocation5 + $0x520] sm:$0xff]  }
  0xb9   :  { %2757 = vmatpush3.bf16.msra.mxu0 %v3016_v46  ;;  %2079 = vmatmul.mubr.bf16.vlgmr.msra.gmra.mrb[12].mxu1 %v213_v50  ;;  %v3066_v46 = vld [vmem:[#allocation5 + $0x5a0] sm:$0xff]   ;;  %v3070_v50 = vld [vmem:[#allocation5 + $0x5a8] sm:$0xff]  }
  0xba   :  { %2758 = vmatprep.subr.bf16.mxu0 %v3018_v51  ;;  %2779 = vmatpush3.bf16.msra.mxu1 %v3017_v49  ;;  %v3069_v49 = vld [vmem:[#allocation5 + $0x528] sm:$0xff]   ;;  %v3071_v51 = vld [vmem:[#allocation5 + $0x570] sm:$0xff]  }
  0xbb   :  { %2780 = vmatprep.subr.bf16.mxu1 %v3019_v53  ;;  %2118 = vmatprep.mubr.bf16.mxu0 %v216_v25  ;;  %v3073_v53 = vld [vmem:[#allocation5 + $0x530] sm:$0xff]  }
  0xbc   :  { %2158 = vmatprep.mubr.bf16.mxu1 %v218_v30 }
  0xbd   :  { %2759 = vmatpush3.bf16.msra.mxu0 %v3020_v54  ;;  %v3074_v54 = vld [vmem:[#allocation5 + $0x5b0] sm:$0xff]  }
  0xbe   :  { %2760 = vmatprep.subr.bf16.mxu0 %v3022_v56  ;;  %2781 = vmatpush3.bf16.msra.mxu1 %v3021_v55  ;;  %v3075_v55 = vld [vmem:[#allocation5 + $0x578] sm:$0xff]  }
  0xbf   :  { %2782 = vmatprep.subr.bf16.mxu1 %v3023_v57  ;;  %v3076_v56 = vld [vmem:[#allocation5 + $0x5f8] sm:$0xff]  }
  0xc0   :  { %v3077_v57 = vld [vmem:[#allocation5 + $0x538] sm:$0xff]  }
  0xc1   :  { %2761 = vmatpush3.bf16.msra.mxu0 %v3024_v58  ;;  %v66_v58 = vld [vmem:[#allocation2 + $0x28] sm:$0xff] }
  0xc2   :  { %2762 = vmatprep.subr.bf16.mxu0 %v3026_v60  ;;  %2783 = vmatpush3.bf16.msra.mxu1 %v3025_v59  ;;  %v3078_v59 = vld [vmem:[#allocation5 + $0x5b8] sm:$0xff]   ;;  %v165_v60 = vrot.slane %v66_v58, %v3263_v35 }
  0xc3   :  { %2784 = vmatprep.subr.bf16.mxu1 %v3027_v61  ;;  %v158_v61 = vcombine.high %v66_v58, %v66_v58 }
  0xc5   :  { %2763 = vmatpush3.bf16.msra.mxu0 %v3028_v62  ;;  %v173_v62 = vcombine.high %v165_v60, %v165_v60 }
  0xc6   :  { %2764 = vmatprep.subr.bf16.mxu0 %v3030_v0  ;;  %2785 = vmatpush3.bf16.msra.mxu1 %v3029_v63  ;;  %v172_v63 = vrot.slane %v158_v61, %v3263_v35  ;;  %v219_v0 = vpack.c.bf16 %v165_v60, %v165_v60 }
  0xc7   :  { %2786 = vmatprep.subr.bf16.mxu1 %v3031_v1  ;;  %v220_v1 = vpack.c.bf16 %v173_v62, %v173_v62 }
  0xc9   :  { %2765 = vmatpush3.bf16.msra.mxu0 %v3032_v2  ;;  %v174_v2 = vcombine.high %v172_v63, %v172_v63 }
  0xca   :  { %2766 = vmatprep.subr.bf16.mxu0 %v3034_v4  ;;  %2787 = vmatpush3.bf16.msra.mxu1 %v3033_v3  ;;  %v221_v3 = vpack.c.bf16 %v172_v63, %v172_v63 }
  0xcb   :  { %2788 = vmatprep.subr.bf16.mxu1 %v3035_v5  ;;  %v222_v4 = vpack.c.bf16 %v174_v2, %v174_v2 }
  0xcd   :  { %2767 = vmatpush3.bf16.msra.mxu0 %v3036_v6  ;;  %v2378_v6 = vld [vmem:[%s3297_s2] ss:$0 sm:$0xff] }
  0xce   :  { %2768 = vmatprep.subr.bf16.mxu0 %v3038_v8  ;;  %2789 = vmatpush3.bf16.msra.mxu1 %v3037_v7 }
  0xcf   :  { %2790 = vmatprep.subr.bf16.mxu1 %v3039_v9 }
  0xd1   :  { %2769 = vmatpush3.bf16.msra.mxu0 %v3040_v10 }
  0xd2   :  { %2770 = vmatprep.subr.bf16.mxu0 %v3042_v12  ;;  %2791 = vmatpush3.bf16.msra.mxu1 %v3041_v11 }
  0xd3   :  { %2792 = vmatprep.subr.bf16.mxu1 %v3043_v13 }
  0xd5   :  { %2771 = vmatpush3.bf16.msra.mxu0 %v3044_v14 }
  0xd6   :  { %2800 = vmatprep.subr.bf16.mxu0 %v3047_v19  ;;  %2793 = vmatpush3.bf16.msra.mxu1 %v3045_v16  ;;  %v3081_v19 = vld [vmem:[#allocation7 + $0x8] sm:$0xff]  }
  0xd7   :  { %2822 = vmatprep.subr.bf16.mxu1 %v3048_v22  ;;  %v3084_v22 = vld [vmem:[#allocation7 + $0x20] sm:$0xff]  }
  0xd8   :  { %2119 = vmatmul.mubr.bf16.vlgmr.msra.gmra.mrb[16].mxu0 %v215_v23 }
  0xd9   :  { %2801 = vmatpush3.bf16.msra.mxu0 %v3049_v24  ;;  %2159 = vmatmul.mubr.bf16.vlgmr.msra.gmra.mrb[16].mxu1 %v217_v28  ;;  %v3085_v28 = vld [vmem:[#allocation7 + $0x28] sm:$0xff]  }
  0xda   :  { %2802 = vmatprep.subr.bf16.mxu0 %v3051_v29  ;;  %2823 = vmatpush3.bf16.msra.mxu1 %v3050_v27 }
  0xdb   :  { %2824 = vmatprep.subr.bf16.mxu1 %v3052_v31  ;;  %2198 = vmatprep.mubr.bf16.mxu0 %v220_v1 }
  0xdc   :  { %2238 = vmatprep.mubr.bf16.mxu1 %v222_v4 }
  0xdd   :  { %2803 = vmatpush3.bf16.msra.mxu0 %v3053_v32 }
  0xde   :  { %2804 = vmatprep.subr.bf16.mxu0 %v3055_v34  ;;  %2825 = vmatpush3.bf16.msra.mxu1 %v3054_v33 }
  0xdf   :  { %2826 = vmatprep.subr.bf16.mxu1 %v3056_v36 }
  0xe1   :  { %2805 = vmatpush3.bf16.msra.mxu0 %v3057_v37  ;;  %v3086_v37 = vld [vmem:[#allocation7 + $0x30] sm:$0xff]  }
  0xe2   :  { %2806 = vmatprep.subr.bf16.mxu0 %v3059_v39  ;;  %2827 = vmatpush3.bf16.msra.mxu1 %v3058_v38  ;;  %v3087_v38 = vld [vmem:[#allocation7 + $0x38] sm:$0xff]  }
  0xe3   :  { %2828 = vmatprep.subr.bf16.mxu1 %v3060_v40 }
  0xe5   :  { %2807 = vmatpush3.bf16.msra.mxu0 %v3061_v41 }
  0xe6   :  { %2808 = vmatprep.subr.bf16.mxu0 %v3063_v43  ;;  %2829 = vmatpush3.bf16.msra.mxu1 %v3062_v42 }
  0xe7   :  { %2830 = vmatprep.subr.bf16.mxu1 %v3064_v44 }
  0xe9   :  { %2809 = vmatpush3.bf16.msra.mxu0 %v3065_v45 }
  0xea   :  { %2810 = vmatprep.subr.bf16.mxu0 %v3067_v47  ;;  %2831 = vmatpush3.bf16.msra.mxu1 %v3066_v46 }
  0xeb   :  { %2832 = vmatprep.subr.bf16.mxu1 %v3068_v48 }
  0xed   :  { %2811 = vmatpush3.bf16.msra.mxu0 %v3069_v49 }
  0xee   :  { %2812 = vmatprep.subr.bf16.mxu0 %v3071_v51  ;;  %2833 = vmatpush3.bf16.msra.mxu1 %v3070_v50 }
  0xef   :  { %2834 = vmatprep.subr.bf16.mxu1 %v3072_v52 }
  0xf1   :  { %2813 = vmatpush3.bf16.msra.mxu0 %v3073_v53 }
  0xf2   :  { %2814 = vmatprep.subr.bf16.mxu0 %v3075_v55  ;;  %2835 = vmatpush3.bf16.msra.mxu1 %v3074_v54 }
  0xf3   :  { %2836 = vmatprep.subr.bf16.mxu1 %v3076_v56 }
  0xf5   :  { %2815 = vmatpush3.bf16.msra.mxu0 %v3077_v57 }
  0xf6   :  { %2837 = vmatpush3.bf16.msra.mxu1 %v3078_v59  ;;  %2853 = vmatprep.subr.bf16.mxu0 %v3188_v18 }
  0xf8   :  { %2199 = vmatmul.mubr.bf16.vlgmr.msra.gmra.mrb[20].mxu0 %v219_v0 }
  0xf9   :  { %2239 = vmatmul.mubr.bf16.vlgmr.msra.gmra.mrb[20].mxu1 %v221_v3  ;;  %2854 = vmatpush3.bf16.msra.mxu0 %v3080_v17 }
  0xfa   :  { %2855 = vmatprep.subr.bf16.mxu0 %v3188_v18  ;;  %2869 = vmatprep.mubr.msk.bf16.mxu0 %vm3189_vm0, %v3188_v18 }
  0xfd   :  { %2856 = vmatpush3.bf16.msra.mxu0 %v3081_v19 }
  0xfe   :  { %2857 = vmatprep.subr.bf16.mxu0 %v3188_v18 }
 0x101   :  { %2858 = vmatpush3.bf16.msra.mxu0 %v3082_v20 }
 0x102   :  { %2859 = vmatprep.subr.bf16.mxu0 %v3188_v18 }
 0x105   :  { %2860 = vmatpush3.bf16.msra.mxu0 %v3083_v21 }
 0x106   :  { %2861 = vmatprep.subr.bf16.mxu0 %v3188_v18 }
 0x109   :  { %2862 = vmatpush3.bf16.msra.mxu0 %v3084_v22 }
 0x10a   :  { %2863 = vmatprep.subr.bf16.mxu0 %v3188_v18 }
 0x10d   :  { %2864 = vmatpush3.bf16.msra.mxu0 %v3085_v28 }
 0x10e   :  { %2865 = vmatprep.subr.bf16.mxu0 %v3188_v18 }
 0x111   :  { %2866 = vmatpush3.bf16.msra.mxu0 %v3086_v37 }
 0x112   :  { %2867 = vmatprep.subr.bf16.mxu0 %v3188_v18 }
 0x115   :  { %2868 = vmatpush3.bf16.msra.mxu0 %v3087_v38 }
 0x12b   :  { %v2596_v5 = vpop.f32.mrb[0].mxu0 }
 0x12c   :  { %v2597_v7 = vpop.f32.mrb[1].mxu0  ;;  %v2618_v8 = vpop.f32.mrb[0].mxu1 }
 0x12d   :  { %v2598_v35 = vadd.f32 %v2597_v7, %v2596_v5  ;;  %v2599_v9 = vpop.f32.mrb[2].mxu0  ;;  %v2619_v10 = vpop.f32.mrb[1].mxu1 }
 0x12e   :  { %v2600_v11 = vpop.f32.mrb[3].mxu0  ;;  %v2620_v13 = vadd.f32 %v2619_v10, %v2618_v8  ;;  %v2621_v14 = vpop.f32.mrb[2].mxu1 }
 0x12f   :  { %v1801_v12 = vadd.f32 %v2598_v35, %v2378_v6  ;;  %v2622_v15 = vpop.f32.mrb[3].mxu1 }
 0x131   :  { %v1841_v16 = vadd.f32 %v2620_v13, %v1801_v12 }
 0x14b   :  { %v2640_v23 = vpop.f32.mrb[4].mxu0 }
 0x14c   :  { %v2641_v24 = vpop.f32.mrb[5].mxu0  ;;  %v2662_v25 = vpop.f32.mrb[4].mxu1 }
 0x14d   :  { %v2642_v26 = vadd.f32 %v2641_v24, %v2640_v23  ;;  %v2643_v27 = vpop.f32.mrb[6].mxu0  ;;  %v2663_v29 = vpop.f32.mrb[5].mxu1  ;;  %v2571_v24 = vld [vmem:[%s3299_s4] ss:$0 sm:$0xff] }
 0x14e   :  { %v2644_v30 = vpop.f32.mrb[7].mxu0  ;;  %v2664_v32 = vadd.f32 %v2663_v29, %v2662_v25  ;;  %v2665_v33 = vpop.f32.mrb[6].mxu1 }
 0x14f   :  { %v1881_v31 = vadd.f32 %v2642_v26, %v1841_v16  ;;  %v2666_v34 = vpop.f32.mrb[7].mxu1 }
 0x151   :  { %v1921_v36 = vadd.f32 %v2664_v32, %v1881_v31 }
 0x16b   :  { %v2684_v39 = vpop.f32.mrb[8].mxu0 }
 0x16c   :  { %v2685_v40 = vpop.f32.mrb[9].mxu0  ;;  %v2706_v41 = vpop.f32.mrb[8].mxu1 }
 0x16d   :  { %v2686_v42 = vadd.f32 %v2685_v40, %v2684_v39  ;;  %v2687_v43 = vpop.f32.mrb[10].mxu0  ;;  %v2707_v44 = vpop.f32.mrb[9].mxu1 }
 0x16e   :  { %v2688_v45 = vpop.f32.mrb[11].mxu0  ;;  %v2708_v47 = vadd.f32 %v2707_v44, %v2706_v41  ;;  %v2709_v48 = vpop.f32.mrb[10].mxu1 }
 0x16f   :  { %v1961_v46 = vadd.f32 %v2686_v42, %v1921_v36  ;;  %v2710_v49 = vpop.f32.mrb[11].mxu1 }
 0x171   :  { %v2001_v50 = vadd.f32 %v2708_v47, %v1961_v46 }
 0x18b   :  { %v2728_v51 = vpop.f32.mrb[12].mxu0 }
 0x18c   :  { %v2729_v52 = vpop.f32.mrb[13].mxu0  ;;  %v2750_v53 = vpop.f32.mrb[12].mxu1 }
 0x18d   :  { %v2730_v54 = vadd.f32 %v2729_v52, %v2728_v51  ;;  %v2731_v55 = vpop.f32.mrb[14].mxu0  ;;  %v2751_v56 = vpop.f32.mrb[13].mxu1 }
 0x18e   :  { %v2732_v57 = vpop.f32.mrb[15].mxu0  ;;  %v2752_v59 = vadd.f32 %v2751_v56, %v2750_v53  ;;  %v2753_v60 = vpop.f32.mrb[14].mxu1 }
 0x18f   :  { %v2041_v58 = vadd.f32 %v2730_v54, %v2001_v50  ;;  %v2754_v61 = vpop.f32.mrb[15].mxu1 }
 0x191   :  { %v2081_v62 = vadd.f32 %v2752_v59, %v2041_v58 }
 0x1ab   :  { %v2772_v63 = vpop.f32.mrb[16].mxu0 }
 0x1ac   :  { %v2773_v0 = vpop.f32.mrb[17].mxu0  ;;  %v2794_v1 = vpop.f32.mrb[16].mxu1 }
 0x1ad   :  { %v2774_v2 = vadd.f32 %v2773_v0, %v2772_v63  ;;  %v2775_v3 = vpop.f32.mrb[18].mxu0  ;;  %v2795_v4 = vpop.f32.mrb[17].mxu1 }
 0x1ae   :  { %v2776_v5 = vpop.f32.mrb[19].mxu0  ;;  %v2796_v7 = vadd.f32 %v2795_v4, %v2794_v1  ;;  %v2797_v8 = vpop.f32.mrb[18].mxu1 }
 0x1af   :  { %v2121_v6 = vadd.f32 %v2774_v2, %v2081_v62  ;;  %v2798_v35 = vpop.f32.mrb[19].mxu1 }
 0x1b1   :  { %v2161_v9 = vadd.f32 %v2796_v7, %v2121_v6 }
 0x1cb   :  { %v2816_v10 = vpop.f32.mrb[20].mxu0 }
 0x1cc   :  { %v2817_v11 = vpop.f32.mrb[21].mxu0  ;;  %v2838_v12 = vpop.f32.mrb[20].mxu1 }
 0x1cd   :  { %v2818_v13 = vadd.f32 %v2817_v11, %v2816_v10  ;;  %v2819_v14 = vpop.f32.mrb[22].mxu0  ;;  %v2839_v15 = vpop.f32.mrb[21].mxu1 }
 0x1ce   :  { %v2820_v16 = vpop.f32.mrb[23].mxu0  ;;  %v2840_v18 = vadd.f32 %v2839_v15, %v2838_v12  ;;  %v2841_v19 = vpop.f32.mrb[22].mxu1 }
 0x1cf   :  { %v2201_v17 = vadd.f32 %v2818_v13, %v2161_v9  ;;  %v2842_v20 = vpop.f32.mrb[23].mxu1 }
 0x1d1   :  { %v2241_v21 = vadd.f32 %v2840_v18, %v2201_v17 }
 0x1d3   :  { %v2246_v22 = vmax.f32 %v2241_v21, 0.0 }
 0x1d5   :  { %v2247_v23 = vpack.c.bf16 %v2246_v22, %v2246_v22 }
 0x1d7   :  { %2870 = vmatmul.mubr.bf16.vlgmr.msra.gmra.mrb[24].mxu0 %v2247_v23 }
 0x2aa   :  { %v2353_v25 = vpop.f32.mrb[24].mxu0 }
 0x2ab   :  { %v2354_v26 = vadd.f32 %v2571_v24, %v2353_v25  ;;  %v2871_v27 = vpop.f32.mrb[25].mxu0 }
 0x2ac   :  { %v2356_v28 = vpop.f32.mrb[26].mxu0 }
 0x2ad   :  { %v2359_v29 = vmax.f32 %v2354_v26, 0.0  ;;  %v2872_v30 = vpop.f32.mrb[27].mxu0 }
 0x2af   :  { %v2360_v31 = vpack.c.bf16 %v2359_v29, %v2359_v29 }
 0x2b1   :  { %2361 = vst [vmem:[#allocation8] sm:$0x1] %v2360_v31 }
 0x2b2   :  { %3165 = shalt.err (!%p3162_p0)
}
 0x2b3   :  { %s3166_s11 = scalar_lea.hbm %s3300_s5, 16 }
 0x2b4   :  { %p3167_p1 = scmp.ne.s32.totalorder %s3300_s5, %s3166_s11  ;;  %p3170_p2 = scmp.lt.u32.totalorder %s3166_s11, %s3300_s5 }
 0x2b6   :  { %p3172_p3 = pnand %p3170_p2, %p3167_p1 }
 0x2b8   :  { %3175 = shalt.err (!%p3172_p3)
}
 0x2b9   :  { %2371 = dma.vmem_to_hbm [thread:$0]  %s2369_s7, 16, %s3300_s5, [#allocation4]  }
 0x2ba   :  { %3180 = dma.done.wait [#allocation4], 16  }
 0x2bb   :  { %3181 = vsyncadd [#allocation4], 4294967280 }
 0x2bc   :  { %2375 = vsyncpa [#allocation3], 1 }
 0x2bd   :  { %2376 = vsyncpa [#allocation6], 1 }
 0x2be   :  { %2377 = vsyncpa [#allocation4], 1 }

</bundles_post_ra>
